<compile_context>
chip_gen: v7x
topology: tpu7x:2x2x1
jax: 0.10.0
libtpu: 0.0.40
codegen_flags: <defaults>
</compile_context>

<pallas_src>
import functools

import jax
import jax.numpy as jnp
from jax.experimental import pallas as pl
from jax.experimental.pallas import tpu as pltpu

LN_EPS = 1e-5   # torch.nn.LayerNorm default
LANE = 128      # TPU vreg lane count
SUBLANE = 8     # TPU vreg sublane count (f32)


def _round_up(n, m):
    return ((n + m - 1) // m) * m


def _pad_axis(a, target, axis):
    if a.shape[axis] == target:
        return a
    widths = [(0, 0)] * a.ndim
    widths[axis] = (0, target - a.shape[axis])
    return jnp.pad(a, widths)


# ------------------------------ fused Pallas kernel ------------------------------ #

def _make_fused_mlp_kernel(n_inputs, hidden_dims):
    """Build the fused kernel body. Static config: number of concatenated inputs and
    the *real* (unpadded) hidden widths (needed for the masked LayerNorm)."""
    n_hidden = len(hidden_dims)

    def _ln_relu(y, gamma, beta, d_real):
        inv_d = 1.0 / float(d_real)
        mean = jnp.sum(y, axis=-1, keepdims=True) * inv_d
        centered = y - mean
        if y.shape[-1] != d_real:
            # Zero the padded lanes so they don't pollute the variance.
            lane = jax.lax.broadcasted_iota(jnp.int32, y.shape, 1)
            centered = jnp.where(lane < d_real, centered, 0.0)
        var = jnp.sum(centered * centered, axis=-1, keepdims=True) * inv_d
        y_hat = centered * jax.lax.rsqrt(var + LN_EPS)
        y_hat = y_hat * gamma + beta
        # ReLU; Dropout is identity in eval mode.
        return jnp.maximum(y_hat, 0.0)

    def kernel(*refs):
        o_ref = refs[-1]
        args = refs[:-1]
        idx = 0
        xs = args[idx:idx + n_inputs]; idx += n_inputs

        # ---- layer 0: folded concat -> sum of per-input matmuls ----
        wchunks = args[idx:idx + n_inputs]; idx += n_inputs
        b0, g0, bt0 = args[idx:idx + 3]; idx += 3
        acc = jnp.dot(xs[0][...], wchunks[0][...], preferred_element_type=jnp.float32)
        for xr, wr in zip(xs[1:], wchunks[1:]):
            acc = acc + jnp.dot(xr[...], wr[...], preferred_element_type=jnp.float32)
        x = _ln_relu(acc + b0[...], g0[...], bt0[...], hidden_dims[0])

        # ---- remaining hidden layers (activation stays in registers/VMEM) ----
        for l in range(1, n_hidden):
            w, b, g, bt = args[idx:idx + 4]; idx += 4
            y = jnp.dot(x, w[...], preferred_element_type=jnp.float32) + b[...]
            x = _ln_relu(y, g[...], bt[...], hidden_dims[l])

        # ---- final projection (no nonlinearity), lane-dense full-width store ----
        wf, bf = args[idx:idx + 2]; idx += 2
        y = jnp.dot(x, wf[...], preferred_element_type=jnp.float32) + bf[...]
        o_ref[...] = y.astype(o_ref.dtype)

    return kernel


# --------------------------------- JAX wrappers --------------------------------- #

def init_mlp_params(key, input_dim, hidden_dims, out_dim, dtype=jnp.float32):
    """Deterministic init mimicking nn.Linear (uniform +/- 1/sqrt(fan_in)) and
    nn.LayerNorm (gamma=1, beta=0). Real (unpadded) shapes; y = x @ W + b layout."""
    params = {"hidden": [], "final": None}
    dims = [input_dim] + list(hidden_dims)
    for in_size, out_size in zip(dims[:-1], dims[1:]):
        key, kw, kb = jax.random.split(key, 3)
        bound = 1.0 / jnp.sqrt(in_size)
        w = jax.random.uniform(kw, (in_size, out_size), dtype, -bound, bound)
        b = jax.random.uniform(kb, (1, out_size), dtype, -bound, bound)
        gamma = jnp.ones((1, out_size), dtype)
        beta = jnp.zeros((1, out_size), dtype)
        params["hidden"].append((w, b, gamma, beta))
    key, kw, kb = jax.random.split(key, 3)
    in_size = hidden_dims[-1]
    bound = 1.0 / jnp.sqrt(in_size)
    w = jax.random.uniform(kw, (in_size, out_dim), dtype, -bound, bound)
    b = jax.random.uniform(kb, (1, out_dim), dtype, -bound, bound)
    params["final"] = (w, b)
    return params


def _prepare_padded_params(raw_params, input_widths):
    """Zero-pad params to lane-dense (multiple-of-128) feature widths and flatten into
    the positional order the fused kernel expects. First-layer W is split per input."""
    hidden = raw_params["hidden"]
    wf, bf = raw_params["final"]
    hidden_dims = tuple(int(w.shape[1]) for (w, _, _, _) in hidden)
    out_dim = int(wf.shape[1])

    flat = []
    w0, b0, g0, bt0 = hidden[0]
    d_pad = _round_up(hidden_dims[0], LANE)
    off = 0
    for width in input_widths:
        flat.append(_pad_axis(w0[off:off + width, :], d_pad, 1))
        off += width
    assert off == w0.shape[0], "sum(input_widths) must equal first-layer input dim"
    flat += [_pad_axis(b0, d_pad, 1), _pad_axis(g0, d_pad, 1), _pad_axis(bt0, d_pad, 1)]

    prev_pad = d_pad
    for (w, b, g, bt) in hidden[1:]:
        d_pad = _round_up(int(w.shape[1]), LANE)
        flat += [_pad_axis(_pad_axis(w, d_pad, 1), prev_pad, 0),
                 _pad_axis(b, d_pad, 1), _pad_axis(g, d_pad, 1), _pad_axis(bt, d_pad, 1)]
        prev_pad = d_pad

    out_pad = _round_up(out_dim, LANE)
    flat += [_pad_axis(_pad_axis(wf, out_pad, 1), prev_pad, 0), _pad_axis(bf, out_pad, 1)]
    return flat, hidden_dims, out_dim, out_pad


def make_fused_mlp(raw_params, input_widths):
    """Returns forward(*inputs) -> (B, out_dim); the entire MLP is ONE pallas_call."""
    input_widths = tuple(int(w) for w in input_widths)
    flat, hidden_dims, out_dim, out_pad = _prepare_padded_params(raw_params, input_widths)
    kernel = _make_fused_mlp_kernel(len(input_widths), hidden_dims)

    def forward(flat_params, *inputs):
        assert len(inputs) == len(input_widths)
        B = inputs[0].shape[0]
        b_pad = _round_up(B, SUBLANE)
        tile_b = min(b_pad, 128)           # batch tile; weights stay resident across tiles
        b_pad = _round_up(b_pad, tile_b)
        xs = [_pad_axis(x, b_pad, 0) for x in inputs]

        in_specs = [pl.BlockSpec((tile_b, int(x.shape[1])), lambda i: (i, 0)) for x in xs]
        in_specs += [pl.BlockSpec(p.shape, lambda i: (0, 0)) for p in flat_params]

        out = pl.pallas_call(
            kernel,
            grid=(b_pad // tile_b,),
            out_shape=jax.ShapeDtypeStruct((b_pad, out_pad), inputs[0].dtype),
            in_specs=in_specs,
            out_specs=pl.BlockSpec((tile_b, out_pad), lambda i: (i, 0)),
            compiler_params=pltpu.CompilerParams(
                dimension_semantics=("parallel",)),   # megacore sharding on v7x
        )(*xs, *flat_params)
        # Strip batch/lane padding outside the kernel (kernel store stays unmasked).
        return out[:B, :out_dim]

    return jax.jit(functools.partial(forward, flat))


# Pure-JAX reference (uses the real, unpadded params) for a sanity check.
def mlp_forward_ref(params, *inputs):
    x = jnp.concatenate(inputs, axis=-1)
    for (w, b, gamma, beta) in params["hidden"]:
        y = x @ w + b
        mean = jnp.mean(y, axis=-1, keepdims=True)
        var = jnp.mean((y - mean) ** 2, axis=-1, keepdims=True)
        y = (y - mean) / jnp.sqrt(var + LN_EPS) * gamma + beta
        x = jnp.maximum(y, 0.0)
    w, b = params["final"]
    return x @ w + b


if __name__ == "__main__":
    key = jax.random.PRNGKey(0)
    kp, k1, k2 = jax.random.split(key, 3)

    batch = 8
    in_widths = (16, 16)            # torch.cat of two 16-wide inputs
    input_dim = sum(in_widths)      # 32
    hidden_dims = [32, 32]
    out_dim = 16

    raw_params = init_mlp_params(kp, input_dim, hidden_dims, out_dim)
    x1 = jax.random.normal(k1, (batch, in_widths[0]), jnp.float32)
    x2 = jax.random.normal(k2, (batch, in_widths[1]), jnp.float32)

    mlp = make_fused_mlp(raw_params, in_widths)
    out = jax.block_until_ready(mlp(x1, x2))

    ref = mlp_forward_ref(raw_params, x1, x2)
    assert out.shape == (batch, out_dim)
    assert jnp.allclose(out, ref, atol=2e-5, rtol=2e-5), "mismatch vs reference"

    print("KERNEL_OK")
</pallas_src>

<mosaic_0001>
module attributes {stable_mosaic.version = 11 : i64} {
  func.func @kernel(%arg0: i32, %arg1: memref<8x16xf32, #tpu.memory_space<vmem>>, %arg2: memref<8x16xf32, #tpu.memory_space<vmem>>, %arg3: memref<16x128xf32, #tpu.memory_space<vmem>>, %arg4: memref<16x128xf32, #tpu.memory_space<vmem>>, %arg5: memref<1x128xf32, #tpu.memory_space<vmem>>, %arg6: memref<1x128xf32, #tpu.memory_space<vmem>>, %arg7: memref<1x128xf32, #tpu.memory_space<vmem>>, %arg8: memref<128x128xf32, #tpu.memory_space<vmem>>, %arg9: memref<1x128xf32, #tpu.memory_space<vmem>>, %arg10: memref<1x128xf32, #tpu.memory_space<vmem>>, %arg11: memref<1x128xf32, #tpu.memory_space<vmem>>, %arg12: memref<128x128xf32, #tpu.memory_space<vmem>>, %arg13: memref<1x128xf32, #tpu.memory_space<vmem>>, %arg14: memref<8x128xf32, #tpu.memory_space<vmem>>) attributes {dimension_semantics = [#tpu.dimension_semantics<parallel>], iteration_bounds = array<i64: 1>, scalar_prefetch = 0 : i64, scratch_operands = 0 : i64, tpu.core_type = #tpu.core_type<tc>, window_params = [{transform_indices = @transform_0, window_bounds = array<i64: 8, 16>}, {transform_indices = @transform_1, window_bounds = array<i64: 8, 16>}, {pipeline_mode = #tpu.pipeline_mode<synchronous>, transform_indices = @transform_2, window_bounds = array<i64: 16, 128>}, {pipeline_mode = #tpu.pipeline_mode<synchronous>, transform_indices = @transform_3, window_bounds = array<i64: 16, 128>}, {pipeline_mode = #tpu.pipeline_mode<synchronous>, transform_indices = @transform_4, window_bounds = array<i64: 1, 128>}, {pipeline_mode = #tpu.pipeline_mode<synchronous>, transform_indices = @transform_5, window_bounds = array<i64: 1, 128>}, {pipeline_mode = #tpu.pipeline_mode<synchronous>, transform_indices = @transform_6, window_bounds = array<i64: 1, 128>}, {pipeline_mode = #tpu.pipeline_mode<synchronous>, transform_indices = @transform_7, window_bounds = array<i64: 128, 128>}, {pipeline_mode = #tpu.pipeline_mode<synchronous>, transform_indices = @transform_8, window_bounds = array<i64: 1, 128>}, {pipeline_mode = #tpu.pipeline_mode<synchronous>, transform_indices = @transform_9, window_bounds = array<i64: 1, 128>}, {pipeline_mode = #tpu.pipeline_mode<synchronous>, transform_indices = @transform_10, window_bounds = array<i64: 1, 128>}, {pipeline_mode = #tpu.pipeline_mode<synchronous>, transform_indices = @transform_11, window_bounds = array<i64: 128, 128>}, {pipeline_mode = #tpu.pipeline_mode<synchronous>, transform_indices = @transform_12, window_bounds = array<i64: 1, 128>}, {transform_indices = @transform_13, window_bounds = array<i64: 8, 128>}]} {
    %c0 = arith.constant 0 : index
    %c0_0 = arith.constant 0 : index
    %0 = vector.load %arg1[%c0, %c0_0] : memref<8x16xf32, #tpu.memory_space<vmem>>, vector<8x16xf32>
    %c0_1 = arith.constant 0 : index
    %c0_2 = arith.constant 0 : index
    %1 = vector.load %arg3[%c0_1, %c0_2] : memref<16x128xf32, #tpu.memory_space<vmem>>, vector<16x128xf32>
    %cst = arith.constant dense<0.000000e+00> : vector<8x128xf32>
    %2 = tpu.matmul %0, %1, %cst {dimension_numbers = #tpu.dot_dimension_numbers<[1], [0], [0], [1], [0, 0, 1, 1], [], []>} : vector<8x16xf32>, vector<16x128xf32>, vector<8x128xf32> -> vector<8x128xf32>
    %c0_3 = arith.constant 0 : index
    %c0_4 = arith.constant 0 : index
    %3 = vector.load %arg2[%c0_3, %c0_4] : memref<8x16xf32, #tpu.memory_space<vmem>>, vector<8x16xf32>
    %c0_5 = arith.constant 0 : index
    %c0_6 = arith.constant 0 : index
    %4 = vector.load %arg4[%c0_5, %c0_6] : memref<16x128xf32, #tpu.memory_space<vmem>>, vector<16x128xf32>
    %cst_7 = arith.constant dense<0.000000e+00> : vector<8x128xf32>
    %5 = tpu.matmul %3, %4, %cst_7 {dimension_numbers = #tpu.dot_dimension_numbers<[1], [0], [0], [1], [0, 0, 1, 1], [], []>} : vector<8x16xf32>, vector<16x128xf32>, vector<8x128xf32> -> vector<8x128xf32>
    %6 = arith.addf %2, %5 : vector<8x128xf32>
    %c0_8 = arith.constant 0 : index
    %c0_9 = arith.constant 0 : index
    %7 = vector.load %arg5[%c0_8, %c0_9] : memref<1x128xf32, #tpu.memory_space<vmem>>, vector<1x128xf32>
    %8 = vector.broadcast %7 : vector<1x128xf32> to vector<8x128xf32>
    %9 = arith.addf %6, %8 : vector<8x128xf32>
    %c0_10 = arith.constant 0 : index
    %c0_11 = arith.constant 0 : index
    %10 = vector.load %arg6[%c0_10, %c0_11] : memref<1x128xf32, #tpu.memory_space<vmem>>, vector<1x128xf32>
    %c0_12 = arith.constant 0 : index
    %c0_13 = arith.constant 0 : index
    %11 = vector.load %arg7[%c0_12, %c0_13] : memref<1x128xf32, #tpu.memory_space<vmem>>, vector<1x128xf32>
    %cst_14 = arith.constant dense<0.000000e+00> : vector<8xf32>
    %12 = vector.multi_reduction <add>, %9, %cst_14 [1] : vector<8x128xf32> to vector<8xf32>
    %13 = vector.shape_cast %12 : vector<8xf32> to vector<8x1xf32>
    %cst_15 = arith.constant 3.125000e-02 : f32
    %14 = vector.broadcast %cst_15 : f32 to vector<8x1xf32>
    %15 = arith.mulf %13, %14 : vector<8x1xf32>
    %16 = vector.broadcast %15 : vector<8x1xf32> to vector<8x128xf32>
    %17 = arith.subf %9, %16 : vector<8x128xf32>
    %18 = tpu.iota {dimensions = array<i32: 1>} : vector<8x128xi32>
    %c32_i32 = arith.constant 32 : i32
    %19 = vector.broadcast %c32_i32 : i32 to vector<8x128xi32>
    %20 = arith.cmpi slt, %18, %19 : vector<8x128xi32>
    %cst_16 = arith.constant 0.000000e+00 : f32
    %21 = vector.broadcast %cst_16 : f32 to vector<8x128xf32>
    %22 = arith.select %20, %17, %21 : vector<8x128xi1>, vector<8x128xf32>
    %23 = arith.mulf %22, %22 : vector<8x128xf32>
    %cst_17 = arith.constant dense<0.000000e+00> : vector<8xf32>
    %24 = vector.multi_reduction <add>, %23, %cst_17 [1] : vector<8x128xf32> to vector<8xf32>
    %25 = vector.shape_cast %24 : vector<8xf32> to vector<8x1xf32>
    %cst_18 = arith.constant 3.125000e-02 : f32
    %26 = vector.broadcast %cst_18 : f32 to vector<8x1xf32>
    %27 = arith.mulf %25, %26 : vector<8x1xf32>
    %cst_19 = arith.constant 9.99999974E-6 : f32
    %28 = vector.broadcast %cst_19 : f32 to vector<8x1xf32>
    %29 = arith.addf %27, %28 : vector<8x1xf32>
    %30 = math.rsqrt %29 : vector<8x1xf32>
    %31 = vector.broadcast %30 : vector<8x1xf32> to vector<8x128xf32>
    %32 = arith.mulf %22, %31 : vector<8x128xf32>
    %33 = vector.broadcast %10 : vector<1x128xf32> to vector<8x128xf32>
    %34 = arith.mulf %32, %33 : vector<8x128xf32>
    %35 = vector.broadcast %11 : vector<1x128xf32> to vector<8x128xf32>
    %36 = arith.addf %34, %35 : vector<8x128xf32>
    %cst_20 = arith.constant 0.000000e+00 : f32
    %37 = vector.broadcast %cst_20 : f32 to vector<8x128xf32>
    %38 = arith.maximumf %36, %37 : vector<8x128xf32>
    %c0_21 = arith.constant 0 : index
    %c0_22 = arith.constant 0 : index
    %39 = vector.load %arg8[%c0_21, %c0_22] : memref<128x128xf32, #tpu.memory_space<vmem>>, vector<128x128xf32>
    %cst_23 = arith.constant dense<0.000000e+00> : vector<8x128xf32>
    %40 = tpu.matmul %38, %39, %cst_23 {dimension_numbers = #tpu.dot_dimension_numbers<[1], [0], [0], [1], [0, 0, 1, 1], [], []>} : vector<8x128xf32>, vector<128x128xf32>, vector<8x128xf32> -> vector<8x128xf32>
    %c0_24 = arith.constant 0 : index
    %c0_25 = arith.constant 0 : index
    %41 = vector.load %arg9[%c0_24, %c0_25] : memref<1x128xf32, #tpu.memory_space<vmem>>, vector<1x128xf32>
    %42 = vector.broadcast %41 : vector<1x128xf32> to vector<8x128xf32>
    %43 = arith.addf %40, %42 : vector<8x128xf32>
    %c0_26 = arith.constant 0 : index
    %c0_27 = arith.constant 0 : index
    %44 = vector.load %arg10[%c0_26, %c0_27] : memref<1x128xf32, #tpu.memory_space<vmem>>, vector<1x128xf32>
    %c0_28 = arith.constant 0 : index
    %c0_29 = arith.constant 0 : index
    %45 = vector.load %arg11[%c0_28, %c0_29] : memref<1x128xf32, #tpu.memory_space<vmem>>, vector<1x128xf32>
    %cst_30 = arith.constant dense<0.000000e+00> : vector<8xf32>
    %46 = vector.multi_reduction <add>, %43, %cst_30 [1] : vector<8x128xf32> to vector<8xf32>
    %47 = vector.shape_cast %46 : vector<8xf32> to vector<8x1xf32>
    %cst_31 = arith.constant 3.125000e-02 : f32
    %48 = vector.broadcast %cst_31 : f32 to vector<8x1xf32>
    %49 = arith.mulf %47, %48 : vector<8x1xf32>
    %50 = vector.broadcast %49 : vector<8x1xf32> to vector<8x128xf32>
    %51 = arith.subf %43, %50 : vector<8x128xf32>
    %52 = tpu.iota {dimensions = array<i32: 1>} : vector<8x128xi32>
    %c32_i32_32 = arith.constant 32 : i32
    %53 = vector.broadcast %c32_i32_32 : i32 to vector<8x128xi32>
    %54 = arith.cmpi slt, %52, %53 : vector<8x128xi32>
    %cst_33 = arith.constant 0.000000e+00 : f32
    %55 = vector.broadcast %cst_33 : f32 to vector<8x128xf32>
    %56 = arith.select %54, %51, %55 : vector<8x128xi1>, vector<8x128xf32>
    %57 = arith.mulf %56, %56 : vector<8x128xf32>
    %cst_34 = arith.constant dense<0.000000e+00> : vector<8xf32>
    %58 = vector.multi_reduction <add>, %57, %cst_34 [1] : vector<8x128xf32> to vector<8xf32>
    %59 = vector.shape_cast %58 : vector<8xf32> to vector<8x1xf32>
    %cst_35 = arith.constant 3.125000e-02 : f32
    %60 = vector.broadcast %cst_35 : f32 to vector<8x1xf32>
    %61 = arith.mulf %59, %60 : vector<8x1xf32>
    %cst_36 = arith.constant 9.99999974E-6 : f32
    %62 = vector.broadcast %cst_36 : f32 to vector<8x1xf32>
    %63 = arith.addf %61, %62 : vector<8x1xf32>
    %64 = math.rsqrt %63 : vector<8x1xf32>
    %65 = vector.broadcast %64 : vector<8x1xf32> to vector<8x128xf32>
    %66 = arith.mulf %56, %65 : vector<8x128xf32>
    %67 = vector.broadcast %44 : vector<1x128xf32> to vector<8x128xf32>
    %68 = arith.mulf %66, %67 : vector<8x128xf32>
    %69 = vector.broadcast %45 : vector<1x128xf32> to vector<8x128xf32>
    %70 = arith.addf %68, %69 : vector<8x128xf32>
    %cst_37 = arith.constant 0.000000e+00 : f32
    %71 = vector.broadcast %cst_37 : f32 to vector<8x128xf32>
    %72 = arith.maximumf %70, %71 : vector<8x128xf32>
    %c0_38 = arith.constant 0 : index
    %c0_39 = arith.constant 0 : index
    %73 = vector.load %arg12[%c0_38, %c0_39] : memref<128x128xf32, #tpu.memory_space<vmem>>, vector<128x128xf32>
    %cst_40 = arith.constant dense<0.000000e+00> : vector<8x128xf32>
    %74 = tpu.matmul %72, %73, %cst_40 {dimension_numbers = #tpu.dot_dimension_numbers<[1], [0], [0], [1], [0, 0, 1, 1], [], []>} : vector<8x128xf32>, vector<128x128xf32>, vector<8x128xf32> -> vector<8x128xf32>
    %c0_41 = arith.constant 0 : index
    %c0_42 = arith.constant 0 : index
    %75 = vector.load %arg13[%c0_41, %c0_42] : memref<1x128xf32, #tpu.memory_space<vmem>>, vector<1x128xf32>
    %76 = vector.broadcast %75 : vector<1x128xf32> to vector<8x128xf32>
    %77 = arith.addf %74, %76 : vector<8x128xf32>
    %c0_43 = arith.constant 0 : index
    %c0_44 = arith.constant 0 : index
    %78 = vector.load %arg14[%c0_43, %c0_44] : memref<8x128xf32, #tpu.memory_space<vmem>>, vector<8x128xf32>
    tpu.vector_store %arg14[%c0_43, %c0_44], %77 {strides = array<i32>} : memref<8x128xf32, #tpu.memory_space<vmem>>, vector<8x128xf32>,
    return
  }
  func.func @transform_0(%arg0: i32) -> (i32, i32) {
    %c0_i32 = arith.constant 0 : i32
    %c0_i32_0 = arith.constant 0 : i32
    return %arg0, %c0_i32 : i32, i32
  }
  func.func @transform_1(%arg0: i32) -> (i32, i32) {
    %c0_i32 = arith.constant 0 : i32
    %c0_i32_0 = arith.constant 0 : i32
    return %arg0, %c0_i32 : i32, i32
  }
  func.func @transform_2(%arg0: i32) -> (i32, i32) {
    %c0_i32 = arith.constant 0 : i32
    %c0_i32_0 = arith.constant 0 : i32
    %c0_i32_1 = arith.constant 0 : i32
    return %c0_i32, %c0_i32_0 : i32, i32
  }
  func.func @transform_3(%arg0: i32) -> (i32, i32) {
    %c0_i32 = arith.constant 0 : i32
    %c0_i32_0 = arith.constant 0 : i32
    %c0_i32_1 = arith.constant 0 : i32
    return %c0_i32, %c0_i32_0 : i32, i32
  }
  func.func @transform_4(%arg0: i32) -> (i32, i32) {
    %c0_i32 = arith.constant 0 : i32
    %c0_i32_0 = arith.constant 0 : i32
    %c0_i32_1 = arith.constant 0 : i32
    return %c0_i32, %c0_i32_0 : i32, i32
  }
  func.func @transform_5(%arg0: i32) -> (i32, i32) {
    %c0_i32 = arith.constant 0 : i32
    %c0_i32_0 = arith.constant 0 : i32
    %c0_i32_1 = arith.constant 0 : i32
    return %c0_i32, %c0_i32_0 : i32, i32
  }
  func.func @transform_6(%arg0: i32) -> (i32, i32) {
    %c0_i32 = arith.constant 0 : i32
    %c0_i32_0 = arith.constant 0 : i32
    %c0_i32_1 = arith.constant 0 : i32
    return %c0_i32, %c0_i32_0 : i32, i32
  }
  func.func @transform_7(%arg0: i32) -> (i32, i32) {
    %c0_i32 = arith.constant 0 : i32
    %c0_i32_0 = arith.constant 0 : i32
    %c0_i32_1 = arith.constant 0 : i32
    return %c0_i32, %c0_i32_0 : i32, i32
  }
  func.func @transform_8(%arg0: i32) -> (i32, i32) {
    %c0_i32 = arith.constant 0 : i32
    %c0_i32_0 = arith.constant 0 : i32
    %c0_i32_1 = arith.constant 0 : i32
    return %c0_i32, %c0_i32_0 : i32, i32
  }
  func.func @transform_9(%arg0: i32) -> (i32, i32) {
    %c0_i32 = arith.constant 0 : i32
    %c0_i32_0 = arith.constant 0 : i32
    %c0_i32_1 = arith.constant 0 : i32
    return %c0_i32, %c0_i32_0 : i32, i32
  }
  func.func @transform_10(%arg0: i32) -> (i32, i32) {
    %c0_i32 = arith.constant 0 : i32
    %c0_i32_0 = arith.constant 0 : i32
    %c0_i32_1 = arith.constant 0 : i32
    return %c0_i32, %c0_i32_0 : i32, i32
  }
  func.func @transform_11(%arg0: i32) -> (i32, i32) {
    %c0_i32 = arith.constant 0 : i32
    %c0_i32_0 = arith.constant 0 : i32
    %c0_i32_1 = arith.constant 0 : i32
    return %c0_i32, %c0_i32_0 : i32, i32
  }
  func.func @transform_12(%arg0: i32) -> (i32, i32) {
    %c0_i32 = arith.constant 0 : i32
    %c0_i32_0 = arith.constant 0 : i32
    %c0_i32_1 = arith.constant 0 : i32
    return %c0_i32, %c0_i32_0 : i32, i32
  }
  func.func @transform_13(%arg0: i32) -> (i32, i32) {
    %c0_i32 = arith.constant 0 : i32
    %c0_i32_0 = arith.constant 0 : i32
    return %arg0, %c0_i32 : i32, i32
  }
}

</mosaic_0001>

<bundles_post_ra>
// kernel: forward.1
= control target key start
LH: loop header
LB: loop body
LE: loop exit
PB: predicated region body
PF: predicated region fallthrough
CT: control target
= control target key end

     0   :  { %18 = vsyncpa [#allocation3], 0  ;;  %s1095_s0 = inlined_call_operand.hbm [shape: f32[8,16], index: 0, kind: input, shape index: {}]   ;;  %s1096_s1 = inlined_call_operand.hbm [shape: f32[8,16], index: 1, kind: input, shape index: {}]   ;;  %s1097_s2 = inlined_call_operand.hbm [shape: f32[16,128], index: 2, kind: input, shape index: {}]   ;;  %s1098_s3 = inlined_call_operand.vmem [shape: f32[16,128], index: 3, kind: input, shape index: {}]   ;;  %s1099_s4 = inlined_call_operand.vmem [shape: f32[1,128], index: 4, kind: input, shape index: {}]   ;;  %s1100_s5 = inlined_call_operand.vmem [shape: f32[1,128], index: 5, kind: input, shape index: {}, may-alias: {5,9}]   ;;  %s1101_s6 = inlined_call_operand.vmem [shape: f32[1,128], index: 6, kind: input, shape index: {}, may-alias: {6,10}]   ;;  %s1102_s7 = inlined_call_operand.hbm [shape: f32[128,128], index: 7, kind: input, shape index: {}]   ;;  %s1103_s8 = inlined_call_operand.vmem [shape: f32[1,128], index: 8, kind: input, shape index: {}]   ;;  %s1104_s9 = inlined_call_operand.vmem [shape: f32[1,128], index: 9, kind: input, shape index: {}, may-alias: {5,9}]   ;;  %s1105_s10 = inlined_call_operand.vmem [shape: f32[1,128], index: 10, kind: input, shape index: {}, may-alias: {6,10}]   ;;  %s1106_s11 = inlined_call_operand.hbm [shape: f32[128,128], index: 11, kind: input, shape index: {}]   ;;  %s1107_s12 = inlined_call_operand.vmem [shape: f32[1,128], index: 12, kind: input, shape index: {}]   ;;  %s1108_s13 = inlined_call_operand.hbm [shape: f32[8,128], index: 13, kind: output, shape index: {}]  }
   0x1   :  { %19 = vsyncpa [#allocation6], 0 }
   0x2   :  { %20 = vsyncpa [#allocation9], 0 }
   0x3   :  { %21 = vsyncpa [#allocation4], 0  ;;  %s877_s25 = smov [#allocation5]   ;;  %s737_s29 = scalar_lea.hbm %s1096_s1, 128 }
   0x4   :  { %s38_s26 = sshll.u32 %s877_s25, 4  ;;  %p738_p0 = scmp.ne.s32.totalorder %s1096_s1, %s737_s29  ;;  %s39_s26 = int_to_ptr.vmem [resolvable:$true] %s38_s26 }
   0x5   :  { %p741_p1 = scmp.lt.u32.totalorder %s737_s29, %s1096_s1 }
   0x7   :  { %p743_p2 = pnand %p741_p1, %p738_p0 }
   0x9   :  { %746 = shalt.err (!%p743_p2)
}
   0xa   :  { %s747_s17 = scalar_lea.vmem %s39_s26, 128  ;;  %p752_p4 = scmp.lt.s32.totalorder %s39_s26, %s39_s26 }
   0xb   :  { %p748_p3 = scmp.ne.s32.totalorder %s39_s26, %s747_s17  ;;  %p753_p5 = scmp.lt.s32.totalorder %s747_s17, %s747_s17 }
   0xd   :  { %p754_p6 = por %p753_p5, %p752_p4 }
   0xf   :  { %p755_p7 = pnand %p754_p6, %p748_p3 }
  0x11   :  { %758 = shalt.err (!%p755_p7)
}
  0x12   :  { %41 = dma.hbm_to_vmem [thread:$0]  %s1096_s1, 128, %s39_s26, [#allocation6]  }
  0x13   :  { %s878_s20 = smov [#allocation8]   ;;  %s879_s22 = smov [#allocation2]  }
  0x14   :  { %s67_s21 = sshll.u32 %s878_s20, 4  ;;  %s28_s23 = sshll.u32 %s879_s22, 4  ;;  %s68_s21 = int_to_ptr.vmem [resolvable:$true] %s67_s21  ;;  %s29_s23 = int_to_ptr.vmem [resolvable:$true] %s28_s23 }
  0x15   :  { %s759_s27 = scalar_lea.hbm %s1102_s7, 2048 }
  0x16   :  { %p760_p8 = scmp.ne.s32.totalorder %s1102_s7, %s759_s27  ;;  %p763_p9 = scmp.lt.u32.totalorder %s759_s27, %s1102_s7 }
  0x18   :  { %p765_p10 = pnand %p763_p9, %p760_p8 }
  0x1a   :  { %768 = shalt.err (!%p765_p10)
}
  0x1b   :  { %s769_s1 = scalar_lea.vmem %s68_s21, 2048  ;;  %p774_p12 = scmp.lt.s32.totalorder %s68_s21, %s68_s21 }
  0x1c   :  { %p770_p11 = scmp.ne.s32.totalorder %s68_s21, %s769_s1  ;;  %p775_p13 = scmp.lt.s32.totalorder %s769_s1, %s769_s1 }
  0x1e   :  { %p776_p0 = por %p775_p13, %p774_p12 }
  0x20   :  { %p777_p1 = pnand %p776_p0, %p770_p11 }
  0x22   :  { %780 = shalt.err (!%p777_p1)
}
  0x23   :  { %s880_s26 = smov 128   ;;  %s881_s15 = smov 8  }
  0x24   :  { %73 = dma.hbm_to_vmem [thread:$0]  %s1102_s7, 2048, %s68_s21, [#allocation9], %s880_s26, %s880_s26, %s881_s15  }
  0x25   :  { %s781_s20 = scalar_lea.hbm %s1095_s0, 128 }
  0x26   :  { %p782_p2 = scmp.ne.s32.totalorder %s1095_s0, %s781_s20  ;;  %p785_p3 = scmp.lt.u32.totalorder %s781_s20, %s1095_s0 }
  0x28   :  { %p787_p4 = pnand %p785_p3, %p782_p2 }
  0x2a   :  { %790 = shalt.err (!%p787_p4)
}
  0x2b   :  { %s791_s28 = scalar_lea.vmem %s29_s23, 128  ;;  %p796_p6 = scmp.lt.s32.totalorder %s29_s23, %s29_s23 }
  0x2c   :  { %p792_p5 = scmp.ne.s32.totalorder %s29_s23, %s791_s28  ;;  %p797_p7 = scmp.lt.s32.totalorder %s791_s28, %s791_s28 }
  0x2e   :  { %p798_p8 = por %p797_p7, %p796_p6 }
  0x30   :  { %p799_p9 = pnand %p798_p8, %p792_p5 }
  0x32   :  { %802 = shalt.err (!%p799_p9)
}
  0x33   :  { %31 = dma.hbm_to_vmem [thread:$0]  %s1095_s0, 128, %s29_s23, [#allocation3]  }
  0x34   :  { %s882_s29 = smov [#allocation7]   ;;  %s883_s14 = smov [#allocation10]  }
  0x35   :  { %s47_s30 = sshll.u32 %s882_s29, 4  ;;  %s85_s1 = sshll.u32 %s883_s14, 4  ;;  %s48_s30 = int_to_ptr.vmem [resolvable:$true] %s47_s30  ;;  %s86_s1 = int_to_ptr.vmem [resolvable:$true] %s85_s1 }
  0x36   :  { %s803_s18 = scalar_lea.hbm %s1097_s2, 256 }
  0x37   :  { %p804_p10 = scmp.ne.s32.totalorder %s1097_s2, %s803_s18  ;;  %p807_p11 = scmp.lt.u32.totalorder %s803_s18, %s1097_s2 }
  0x39   :  { %p809_p12 = pnand %p807_p11, %p804_p10 }
  0x3b   :  { %812 = shalt.err (!%p809_p12)
}
  0x3c   :  { %s813_s0 = scalar_lea.vmem %s48_s30, 256  ;;  %p818_p0 = scmp.lt.s32.totalorder %s48_s30, %s48_s30 }
  0x3d   :  { %p814_p13 = scmp.ne.s32.totalorder %s48_s30, %s813_s0  ;;  %p819_p1 = scmp.lt.s32.totalorder %s813_s0, %s813_s0 }
  0x3f   :  { %p820_p2 = por %p819_p1, %p818_p0 }
  0x41   :  { %p821_p3 = pnand %p820_p2, %p814_p13 }
  0x43   :  { %824 = shalt.err (!%p821_p3)
}
  0x44   :  { %53 = dma.hbm_to_vmem [thread:$0]  %s1097_s2, 256, %s48_s30, [#allocation6], %s880_s26, %s880_s26, %s881_s15  }
  0x45   :  { %s825_s7 = scalar_lea.hbm %s1106_s11, 2048 }
  0x46   :  { %p826_p4 = scmp.ne.s32.totalorder %s1106_s11, %s825_s7  ;;  %p829_p5 = scmp.lt.u32.totalorder %s825_s7, %s1106_s11 }
  0x48   :  { %p831_p6 = pnand %p829_p5, %p826_p4 }
  0x4a   :  { %834 = shalt.err (!%p831_p6)
}
  0x4b   :  { %s835_s17 = scalar_lea.vmem %s86_s1, 2048  ;;  %p840_p8 = scmp.lt.s32.totalorder %s86_s1, %s86_s1 }
  0x4c   :  { %p836_p7 = scmp.ne.s32.totalorder %s86_s1, %s835_s17  ;;  %p841_p9 = scmp.lt.s32.totalorder %s835_s17, %s835_s17 }
  0x4e   :  { %p842_p10 = por %p841_p9, %p840_p8 }
  0x50   :  { %p843_p11 = pnand %p842_p10, %p836_p7 }
  0x52   :  { %846 = shalt.err (!%p843_p11)
}
  0x53   :  { %91 = dma.hbm_to_vmem [thread:$0]  %s1106_s11, 2048, %s86_s1, [#allocation9], %s880_s26, %s880_s26, %s881_s15  }
  0x54   :  { %869 = dma.done.wait [#allocation3], 128  }
  0x55   :  { %870 = vsyncadd [#allocation3], 4294967168 }
  0x56   :  { %871 = dma.done.wait [#allocation6], 384  }
  0x57   :  { %872 = vsyncadd [#allocation6], 4294966912 }
  0x58   :  { %873 = dma.done.wait [#allocation9], 4096  }
  0x59   :  { %874 = vsyncadd [#allocation9], 4294963200  ;;  %v884_v0 = vmov 0.0|0.0   ;;  %vm885_vm0 = vmmov 0   ;;  %v886_v1 = vmov 0.0   ;;  %v113_v2 = vld [vmem:[%s1098_s3] sm:$0xff]  ;;  %v276_v23 = vlaneseq }
  0x5a   :  { %668 = vmatprep.subr.bf16.mxu0 %v884_v0  ;;  %671 = vmatprep.subr.bf16.mxu1 %v884_v0  ;;  %v114_v3 = vld [vmem:[%s1098_s3 + $0x8] sm:$0xff]  ;;  %v110_v4 = vld [vmem:[#allocation7] sm:$0xff]  ;;  %v111_v6 = vld [vmem:[#allocation7 + $0x8] sm:$0xff]  ;;  %vm115_vm1 = vcmask 130048   ;;  %s887_s28 = smov [#allocation11]  }
  0x5b   :  { %588 = vmatprep.mubr.msk.f32.mxu0 %vm885_vm0, %v886_v1  ;;  %595 = vmatprep.mubr.msk.f32.mxu1 %vm885_vm0, %v886_v1  ;;  %v669_v5 = vpack.c.bf16 %v114_v3, %v113_v2  ;;  %v672_v7 = vpack.c.bf16 %v111_v6, %v110_v4  ;;  %v112_v8 = vld [vmem:[#allocation5] sm:$0xff]  ;;  %v109_v9 = vld [vmem:[#allocation2] sm:$0xff]  ;;  %v304_v19 = vld [vmem:[#allocation8 + $0x10] sm:$0xff]  ;;  %v1046_v24 = vand.u32 127, %v276_v23  ;;  %s524_s7 = sshll.u32 %s887_s28, 4  ;;  %s525_s7 = int_to_ptr.vmem [resolvable:$true] %s524_s7 }
  0x5c   :  { %v537_v13 = vld [vmem:[%s1099_s4] ss:$0 sm:$0xff]  ;;  %v303_v18 = vld [vmem:[#allocation8 + $0x8] sm:$0xff]  ;;  %v305_v21 = vld [vmem:[#allocation8 + $0x18] sm:$0xff]  ;;  %p852_p13 = scmp.lt.s32.totalorder %s525_s7, %s525_s7 }
  0x5d   :  { %670 = vmatpush3.bf16.msra.mxu0 %v669_v5  ;;  %673 = vmatpush3.bf16.msra.mxu1 %v672_v7  ;;  %v302_v17 = vld [vmem:[#allocation8] sm:$0xff]  ;;  %v678_v22 = vpack.c.bf16 %v305_v21, %v304_v19  ;;  %vm278_vm2 = vcmp.lt.s32.totalorder %v1046_v24, 32  ;;  %v307_v31 = vld [vmem:[#allocation8 + $0x28] sm:$0xff]  ;;  %v308_v33 = vld [vmem:[#allocation8 + $0x30] sm:$0xff] }
  0x5e   :  { %674 = vmatprep.subr.bf16.mxu0 %v884_v0  ;;  %698 = vmatprep.subr.bf16.mxu1 %v884_v0  ;;  %v675_v20 = vpack.c.bf16 %v303_v18, %v302_v17  ;;  %v306_v30 = vld [vmem:[#allocation8 + $0x20] sm:$0xff]  ;;  %v309_v34 = vld [vmem:[#allocation8 + $0x38] sm:$0xff]  ;;  %v311_v37 = vld [vmem:[#allocation8 + $0x48] sm:$0xff] }
  0x5f   :  { %v681_v32 = vpack.c.bf16 %v307_v31, %v306_v30  ;;  %v684_v35 = vpack.c.bf16 %v309_v34, %v308_v33  ;;  %v310_v36 = vld [vmem:[#allocation8 + $0x40] sm:$0xff]  ;;  %v312_v39 = vld [vmem:[#allocation8 + $0x50] sm:$0xff]  ;;  %v313_v40 = vld [vmem:[#allocation8 + $0x58] sm:$0xff] }
  0x60   :  { %589 = vmatmul.mubr.msk.f32.vlgmr.msra.gmra.mrb[0].mxu0 %vm115_vm1, %v112_v8  ;;  %596 = vmatmul.mubr.msk.f32.vlgmr.msra.gmra.mrb[0].mxu1 %vm115_vm1, %v109_v9  ;;  %v687_v38 = vpack.c.bf16 %v311_v37, %v310_v36  ;;  %v690_v41 = vpack.c.bf16 %v313_v40, %v312_v39  ;;  %v314_v42 = vld [vmem:[#allocation8 + $0x60] sm:$0xff]  ;;  %v315_v43 = vld [vmem:[#allocation8 + $0x68] sm:$0xff]  ;;  %v316_v45 = vld [vmem:[#allocation8 + $0x70] sm:$0xff] }
  0x61   :  { %630 = vmatprep.mubr.msk.f32.mxu0 %vm885_vm0, %v886_v1  ;;  %665 = vmatprep.mubr.msk.f32.mxu1 %vm885_vm0, %v886_v1  ;;  %v693_v44 = vpack.c.bf16 %v315_v43, %v314_v42  ;;  %v317_v46 = vld [vmem:[#allocation8 + $0x78] sm:$0xff]  ;;  %v538_v52 = vld [vmem:[%s1100_s5] ss:$0 sm:$0xff]  ;;  %v425_v63 = vld [vmem:[#allocation10 + $0x8] sm:$0xff] }
  0x62   :  { %676 = vmatpush3.bf16.msra.mxu0 %v675_v20  ;;  %v696_v47 = vpack.c.bf16 %v317_v46, %v316_v45  ;;  %v539_v54 = vld [vmem:[%s1101_s6] ss:$0 sm:$0xff]  ;;  %v426_v1 = vld [vmem:[#allocation10 + $0x10] sm:$0xff]  ;;  %v427_v3 = vld [vmem:[#allocation10 + $0x18] sm:$0xff] }
  0x63   :  { %677 = vmatprep.subr.bf16.mxu0 %v884_v0  ;;  %v540_v58 = vld [vmem:[%s1103_s8] ss:$0 sm:$0xff]  ;;  %v702_v4 = vpack.c.bf16 %v427_v3, %v426_v1  ;;  %v433_v17 = vld [vmem:[#allocation10 + $0x48] sm:$0xff]  ;;  %v434_v19 = vld [vmem:[#allocation10 + $0x50] sm:$0xff] }
  0x64   :  { %v424_v62 = vld [vmem:[#allocation10] sm:$0xff]  ;;  %v435_v20 = vld [vmem:[#allocation10 + $0x58] sm:$0xff]  ;;  %v437_v23 = vld [vmem:[#allocation10 + $0x68] sm:$0xff] }
  0x65   :  { %v699_v2 = vpack.c.bf16 %v425_v63, %v424_v62  ;;  %v714_v21 = vpack.c.bf16 %v435_v20, %v434_v19  ;;  %v542_v34 = vld [vmem:[%s1105_s10] ss:$0 sm:$0xff] }
  0x66   :  { %679 = vmatpush3.bf16.msra.mxu0 %v678_v22  ;;  %v436_v22 = vld [vmem:[#allocation10 + $0x60] sm:$0xff] }
  0x67   :  { %680 = vmatprep.subr.bf16.mxu0 %v884_v0  ;;  %700 = vmatpush3.bf16.msra.mxu1 %v699_v2  ;;  %v717_v24 = vpack.c.bf16 %v437_v23, %v436_v22 }
  0x68   :  { %701 = vmatprep.subr.bf16.mxu1 %v884_v0 }
  0x6a   :  { %682 = vmatpush3.bf16.msra.mxu0 %v681_v32  ;;  %v541_v32 = vld [vmem:[%s1104_s9] ss:$0 sm:$0xff]  ;;  %s847_s9 = scalar_lea.vmem %s525_s7, 128 }
  0x6b   :  { %683 = vmatprep.subr.bf16.mxu0 %v884_v0  ;;  %703 = vmatpush3.bf16.msra.mxu1 %v702_v4  ;;  %p848_p12 = scmp.ne.s32.totalorder %s525_s7, %s847_s9  ;;  %p853_p0 = scmp.lt.s32.totalorder %s847_s9, %s847_s9 }
  0x6c   :  { %704 = vmatprep.subr.bf16.mxu1 %v884_v0 }
  0x6d   :  { %p854_p1 = por %p853_p0, %p852_p13 }
  0x6e   :  { %685 = vmatpush3.bf16.msra.mxu0 %v684_v35 }
  0x6f   :  { %686 = vmatprep.subr.bf16.mxu0 %v884_v0  ;;  %p855_p2 = pnand %p854_p1, %p848_p12 }
  0x72   :  { %688 = vmatpush3.bf16.msra.mxu0 %v687_v38 }
  0x73   :  { %689 = vmatprep.subr.bf16.mxu0 %v884_v0 }
  0x76   :  { %691 = vmatpush3.bf16.msra.mxu0 %v690_v41 }
  0x77   :  { %692 = vmatprep.subr.bf16.mxu0 %v884_v0 }
  0x7a   :  { %694 = vmatpush3.bf16.msra.mxu0 %v693_v44 }
  0x7b   :  { %695 = vmatprep.subr.bf16.mxu0 %v884_v0 }
  0x7e   :  { %697 = vmatpush3.bf16.msra.mxu0 %v696_v47 }
 0x133   :  { %v185_v10 = vpop.f32.mrb[0].mxu0  ;;  %v258_v11 = vpop.f32.mrb[0].mxu1 }
 0x134   :  { %v590_v12 = vpop.f32.mrb[1].mxu0  ;;  %v259_v14 = vadd.f32 %v258_v11, %v185_v10  ;;  %v597_v15 = vpop.f32.mrb[1].mxu1  ;;  %v428_v10 = vld [vmem:[#allocation10 + $0x20] sm:$0xff]  ;;  %v429_v11 = vld [vmem:[#allocation10 + $0x28] sm:$0xff] }
 0x135   :  { %v705_v12 = vpack.c.bf16 %v429_v11, %v428_v10 }
 0x136   :  { %v269_v16 = vadd.f32 %v537_v13, %v259_v14  ;;  %v430_v13 = vld [vmem:[#allocation10 + $0x30] sm:$0xff]  ;;  %v431_v14 = vld [vmem:[#allocation10 + $0x38] sm:$0xff] }
 0x137   :  { %706 = vmatpush3.bf16.msra.mxu1 %v705_v12  ;;  %v708_v15 = vpack.c.bf16 %v431_v14, %v430_v13 }
 0x138   :  { %272 = vadd.xlane.f32.xlu0 %v269_v16  ;;  %707 = vmatprep.subr.bf16.mxu1 %v884_v0 }
 0x13b   :  { %709 = vmatpush3.bf16.msra.mxu1 %v708_v15 }
 0x13c   :  { %710 = vmatprep.subr.bf16.mxu1 %v884_v0 }
 0x1c5   :  { %v273_v25 = vpop.xlane.xlu0 %272 }
 0x1c6   :  { %v274_v26 = vmul.f32 0.03125, %v273_v25  ;;  %v438_v25 = vld [vmem:[#allocation10 + $0x70] sm:$0xff] }
 0x1c8   :  { %v275_v27 = vsub.f32 %v269_v16, %v274_v26  ;;  %v432_v16 = vld [vmem:[#allocation10 + $0x40] sm:$0xff]  ;;  %v439_v26 = vld [vmem:[#allocation10 + $0x78] sm:$0xff] }
 0x1c9   :  { %v711_v18 = vpack.c.bf16 %v433_v17, %v432_v16 }
 0x1ca   :  { %v279_v28 = vsel %vm278_vm2, %v275_v27, 0.0  ;;  %v720_v27 = vpack.c.bf16 %v439_v26, %v438_v25 }
 0x1cb   :  { %v280_v29 = vmul.f32 %v279_v28, %v279_v28  ;;  %712 = vmatpush3.bf16.msra.mxu1 %v711_v18 }
 0x1cc   :  { %713 = vmatprep.subr.bf16.mxu1 %v884_v0 }
 0x1cd   :  { %281 = vadd.xlane.f32.xlu0 %v280_v29 }
 0x1cf   :  { %715 = vmatpush3.bf16.msra.mxu1 %v714_v21 }
 0x1d0   :  { %716 = vmatprep.subr.bf16.mxu1 %v884_v0 }
 0x1d3   :  { %718 = vmatpush3.bf16.msra.mxu1 %v717_v24 }
 0x1d4   :  { %719 = vmatprep.subr.bf16.mxu1 %v884_v0  ;;  %v543_v0 = vld [vmem:[%s1107_s12] ss:$0 sm:$0xff] }
 0x1d7   :  { %721 = vmatpush3.bf16.msra.mxu1 %v720_v27 }
 0x25a   :  { %v282_v48 = vpop.xlane.xlu0 %281 }
 0x25b   :  { %v283_v49 = vmul.f32 0.03125, %v282_v48 }
 0x25d   :  { %v284_v50 = vadd.f32 1e-05, %v283_v49 }
 0x25f   :  { %733 = vrsqrt.f32 %v284_v50 }
 0x269   :  { %v734_v51 = vpop.eup %733 }
 0x26a   :  { %v286_v53 = vmul.f32 %v734_v51, %v279_v28 }
 0x26c   :  { %v293_v55 = vmul.f32 %v538_v52, %v286_v53 }
 0x26e   :  { %v300_v56 = vadd.f32 %v539_v54, %v293_v55 }
 0x270   :  { %v301_v57 = vmax.f32 %v300_v56, 0.0 }
 0x272   :  { %631 = vmatmul.mubr.f32.vlgmr.msra.gmra.mrb[2].mxu0 %v301_v57 }
 0x345   :  { %v391_v59 = vpop.f32.mrb[2].mxu0 }
 0x346   :  { %v392_v60 = vadd.f32 %v540_v58, %v391_v59  ;;  %v632_v61 = vpop.f32.mrb[3].mxu0 }
 0x348   :  { %397 = vadd.xlane.f32.xlu1 %v392_v60 }
 0x3d5   :  { %v398_v5 = vpop.xlane.xlu1 %397 }
 0x3d6   :  { %v399_v6 = vmul.f32 0.03125, %v398_v5 }
 0x3d8   :  { %v400_v7 = vsub.f32 %v392_v60, %v399_v6 }
 0x3da   :  { %v401_v8 = vsel %vm278_vm2, %v400_v7, 0.0 }
 0x3db   :  { %v402_v9 = vmul.f32 %v401_v8, %v401_v8 }
 0x3dd   :  { %403 = vadd.xlane.f32.xlu1 %v402_v9 }
 0x46a   :  { %v404_v28 = vpop.xlane.xlu1 %403 }
 0x46b   :  { %v405_v29 = vmul.f32 0.03125, %v404_v28 }
 0x46d   :  { %v406_v30 = vadd.f32 1e-05, %v405_v29 }
 0x46f   :  { %735 = vrsqrt.f32 %v406_v30 }
 0x479   :  { %v736_v31 = vpop.eup %735 }
 0x47a   :  { %v408_v33 = vmul.f32 %v736_v31, %v401_v8 }
 0x47c   :  { %v415_v35 = vmul.f32 %v541_v32, %v408_v33 }
 0x47e   :  { %v422_v36 = vadd.f32 %v542_v34, %v415_v35 }
 0x480   :  { %v423_v37 = vmax.f32 %v422_v36, 0.0 }
 0x482   :  { %666 = vmatmul.mubr.f32.vlgmr.msra.gmra.mrb[2].mxu1 %v423_v37 }
 0x555   :  { %v513_v38 = vpop.f32.mrb[2].mxu1 }
 0x556   :  { %v514_v39 = vadd.f32 %v543_v0, %v513_v38  ;;  %v667_v40 = vpop.f32.mrb[3].mxu1 }
 0x558   :  { %517 = vst [vmem:[#allocation11] sm:$0xff] %v514_v39 }
 0x559   :  { %858 = shalt.err (!%p855_p2)
}
 0x55a   :  { %s859_s29 = scalar_lea.hbm %s1108_s13, 128 }
 0x55b   :  { %p860_p3 = scmp.ne.s32.totalorder %s1108_s13, %s859_s29  ;;  %p863_p4 = scmp.lt.u32.totalorder %s859_s29, %s1108_s13 }
 0x55d   :  { %p865_p5 = pnand %p863_p4, %p860_p3 }
 0x55f   :  { %868 = shalt.err (!%p865_p5)
}
 0x560   :  { %527 = dma.vmem_to_hbm [thread:$0]  %s525_s7, 128, %s1108_s13, [#allocation4]  }
 0x561   :  { %875 = dma.done.wait [#allocation4], 128  }
 0x562   :  { %876 = vsyncadd [#allocation4], 4294967168 }
 0x563   :  { %531 = vsyncpa [#allocation3], 1 }
 0x564   :  { %532 = vsyncpa [#allocation6], 1 }
 0x565   :  { %533 = vsyncpa [#allocation9], 1 }
 0x566   :  { %534 = vsyncpa [#allocation4], 1 }

</bundles_post_ra>
